<compile_context>
chip_gen: v7x
topology: tpu7x:2x2x1
jax: 0.10.0
libtpu: 0.0.40
codegen_flags: <defaults>
</compile_context>

<pallas_src>
import functools

import jax
import jax.numpy as jnp
from jax import lax
from jax.experimental import pallas as pl


def _round_up(x, m):
    return ((x + m - 1) // m) * m


# --------------------- Single fused CLING forward kernel ---------------------

def _cling_kernel(x_ref, wbig_ref, wattbd_ref, batt_ref, qsel_ref, esel_ref,
                  wfc1_ref, bfc1_ref, wfc2_ref, bfc2_ref,
                  logits_ref, beta_ref, *, n_valid):
    """Whole padded batch in one tile.

    x_ref      : [Np, F + M*(F+E)]   pre-concatenated [self | nm_0 | em_0 | ...]
    wbig_ref   : [F + M*(F+E), M*D]  block-structured encoder weight (prep folded in)
    wattbd_ref : [M*D, M*D]          block-diagonal HAN projection
    batt_ref   : [1, M*D]            tiled HAN bias
    qsel_ref   : [M*D, M]            per-metapath q selector
    esel_ref   : [M, M*D]            beta -> lane-block expander
    wfc1_ref   : [M*D, H1]           fc1 weight repeated per metapath block
    """
    # Encoder: all metapaths + heads in one matmul, ReLU.            [Np, M*D]
    x_cat = jnp.maximum(
        jnp.dot(x_ref[...], wbig_ref[...], preferred_element_type=jnp.float32),
        0.0)

    # HAN semantic attention; batch mean must ignore the Np - n_valid padded rows.
    h = jnp.tanh(
        jnp.dot(x_cat, wattbd_ref[...], preferred_element_type=jnp.float32)
        + batt_ref[...])
    row = lax.broadcasted_iota(jnp.int32, h.shape, 0)
    mask = (row < n_valid).astype(jnp.float32)
    hbar = jnp.sum(h * mask, axis=0, keepdims=True) * (1.0 / n_valid)    # [1, M*D]
    scores = jnp.dot(hbar, qsel_ref[...],
                     preferred_element_type=jnp.float32)                 # [1, M]
    scores = scores - jnp.max(scores, axis=1, keepdims=True)
    ex = jnp.exp(scores)
    beta = ex / jnp.sum(ex, axis=1, keepdims=True)                       # [1, M]
    beta_ref[...] = beta.astype(beta_ref.dtype)

    # Metapath combine (folded into fc1) + classifier head.
    beta_t = jnp.dot(beta, esel_ref[...],
                     preferred_element_type=jnp.float32)                 # [1, M*D]
    hid = jnp.maximum(
        jnp.dot(x_cat * beta_t, wfc1_ref[...],
                preferred_element_type=jnp.float32) + bfc1_ref[...],
        0.0)                                                             # [Np, H1]
    logits = (jnp.dot(hid, wfc2_ref[...], preferred_element_type=jnp.float32)
              + bfc2_ref[...])                                           # [Np, C]
    logits_ref[...] = logits.astype(logits_ref.dtype)


def cling_forward(x_in, w_big, w_attbd, b_att_t, q_sel, e_sel,
                  w_fc1_rep, b_fc1, w_fc2, b_fc2, *, n_valid, n_mp):
    Np, K = x_in.shape
    N = w_big.shape[1]
    MD = w_attbd.shape[0]
    H1 = w_fc1_rep.shape[1]
    C = w_fc2.shape[1]

    def full(shape):
        return pl.BlockSpec(shape, lambda: (0,) * len(shape))

    logits, beta = pl.pallas_call(
        functools.partial(_cling_kernel, n_valid=n_valid),
        out_shape=(jax.ShapeDtypeStruct((Np, C), jnp.float32),
                   jax.ShapeDtypeStruct((1, n_mp), jnp.float32)),
        in_specs=[
            full((Np, K)),       # x_in
            full((K, N)),        # W_big
            full((MD, MD)),      # W_attBD
            full((1, MD)),       # b_att tiled
            full((MD, n_mp)),    # Q_sel
            full((n_mp, MD)),    # E_sel
            full((MD, H1)),      # W_fc1 repeated
            full((1, H1)),       # b_fc1
            full((H1, C)),       # W_fc2
            full((1, C)),        # b_fc2
        ],
        out_specs=(full((Np, C)), full((1, n_mp))),
    )(x_in, w_big, w_attbd, b_att_t, q_sel, e_sel, w_fc1_rep, b_fc1, w_fc2, b_fc2)
    return logits, beta


# ------------------------------ Model wrapper -------------------------------

class CLINGPallas:
    """Synthetic CLING forward: depth=1, bias-free aggregators/prep, eval dropout."""

    def __init__(self, key, *, n_nodes=64, feats_dim=16, prep_len=32, edge_dim=8,
                 n_mp=2, n_head=2, output_dim=16, n_samples=4, n_classes=4,
                 max_degree=8):
        self.n_mp, self.n_head = n_mp, n_head
        self.n_samples = n_samples
        self.n_classes = n_classes
        self.feats_dim = feats_dim
        self.edge_dim = edge_dim
        D = output_dim * n_head          # per-metapath output width (depth=1)
        self.mp_dim = D

        ks = jax.random.split(key, 16)
        s = 0.1
        W_prep = s * jax.random.normal(ks[0], (feats_dim, prep_len), jnp.float32)
        Wself = s * jax.random.normal(ks[1], (n_mp, n_head, prep_len, output_dim),
                                      jnp.float32)
        Wne = s * jax.random.normal(ks[2], (n_mp, n_head, prep_len + edge_dim,
                                            output_dim), jnp.float32)
        W_att = s * jax.random.normal(ks[3], (D, D), jnp.float32)
        b_att = s * jax.random.normal(ks[4], (D,), jnp.float32)
        q_att = s * jax.random.normal(ks[5], (D, 1), jnp.float32)
        W_fc1 = s * jax.random.normal(ks[6], (D, 32), jnp.float32)
        b_fc1 = s * jax.random.normal(ks[7], (32,), jnp.float32)
        W_fc2 = s * jax.random.normal(ks[8], (32, n_classes), jnp.float32)
        b_fc2 = s * jax.random.normal(ks[9], (n_classes,), jnp.float32)

        # Registered buffers of the synthetic problem.
        self.feats = jax.random.normal(ks[10], (n_nodes, feats_dim), jnp.float32)
        self.adjs = jax.random.randint(ks[11], (n_mp, n_nodes, max_degree),
                                       0, n_nodes, jnp.int32)
        self.edge_emb = jax.random.normal(ks[12], (n_mp, n_nodes, edge_dim),
                                          jnp.float32)

        # ------------- Weight pre-fusion (all exact, done once at init) -------------
        HO = D
        # Heads concatenated on the output axis (head0 | head1 | ...), matching
        # the reference torch.cat over heads.
        Wself_cat = Wself.transpose(0, 2, 1, 3).reshape(n_mp, prep_len, HO)
        # NOTE: assumes the aggregator concat order is [prep(neigh) | edge].
        Wne_feat = Wne[:, :, :prep_len, :].transpose(0, 2, 1, 3).reshape(
            n_mp, prep_len, HO)
        Wne_edge = Wne[:, :, prep_len:, :].transpose(0, 2, 1, 3).reshape(
            n_mp, edge_dim, HO)
        # Fold the (linear, bias-free) prep projection into the node-feature weights:
        # prep(x) @ W == x @ (W_prep @ W).
        Wself_fold = jnp.einsum('fp,mpo->mfo', W_prep, Wself_cat)   # [M, F, HO]
        Wnef_fold = jnp.einsum('fp,mpo->mfo', W_prep, Wne_feat)     # [M, F, HO]

        # Single block-structured encoder weight:
        #   x_cat = relu([self | nm_0 | em_0 | nm_1 | em_1] @ W_big)
        F, E, M = feats_dim, edge_dim, n_mp
        K = F + M * (F + E)
        W_big = jnp.zeros((K, M * HO), jnp.float32)
        for m in range(M):
            c = slice(m * HO, (m + 1) * HO)
            W_big = W_big.at[0:F, c].set(Wself_fold[m])
            r0 = F + m * (F + E)
            W_big = W_big.at[r0:r0 + F, c].set(Wnef_fold[m])
            W_big = W_big.at[r0 + F:r0 + F + E, c].set(Wne_edge[m])
        self.W_big = W_big

        # HAN semantic-attention constants.
        MD = M * D
        W_attBD = jnp.zeros((MD, MD), jnp.float32)
        Q_sel = jnp.zeros((MD, M), jnp.float32)
        E_sel = jnp.zeros((M, MD), jnp.float32)
        for m in range(M):
            blk = slice(m * D, (m + 1) * D)
            W_attBD = W_attBD.at[blk, blk].set(W_att)
            Q_sel = Q_sel.at[blk, m].set(q_att[:, 0])
            E_sel = E_sel.at[m, blk].set(1.0)
        self.W_attBD = W_attBD
        self.b_att_t = jnp.tile(b_att.reshape(1, -1), (1, M))       # [1, MD]
        self.Q_sel = Q_sel
        self.E_sel = E_sel
        # Metapath combine folded into fc1:
        #   (sum_m beta_m x_m) @ W_fc1 == (x_cat * beta_tiled) @ [W_fc1; ...; W_fc1]
        self.W_fc1_rep = jnp.concatenate([W_fc1] * M, axis=0)       # [MD, 32]
        self.b_fc1 = b_fc1.reshape(1, -1)
        self.W_fc2 = W_fc2
        self.b_fc2 = b_fc2.reshape(1, -1)

    def __call__(self, ids):
        B = ids.shape[0]
        # TODO(synk): B > 128 needs a two-pass (tiled encoder + attention) path;
        # the fully fused kernel requires the whole batch in one row tile.
        assert B <= 128, "fused CLING kernel supports batches up to 128 rows"
        M, S = self.n_mp, self.n_samples
        F, E = self.feats_dim, self.edge_dim

        # Pad only the index vector; every gathered tensor comes out pre-padded.
        Np = max(8, _round_up(B, 8))
        ids_p = jnp.pad(ids, (0, Np - B))

        # XLA glue: gathers + mean over the S-samples axis done in HBM so the
        # kernel sees lane-friendly 2-D slabs (~S x fewer bytes DMA'd).
        # TODO(synk): the gathers themselves stay as XLA ops; moving them into
        # the kernel would force 1-row Element blocks and is not the bottleneck.
        self_raw = self.feats[ids_p]                                  # [Np, F]
        neigh = self.adjs[:, ids_p, :S]                               # [M, Np, S]
        flat = neigh.reshape(M, Np * S)
        neigh_mean = jnp.mean(
            self.feats[flat].reshape(M, Np, S, F), axis=2)            # [M, Np, F]
        edge_raw = jax.vmap(lambda tbl, idx: tbl[idx])(self.edge_emb, flat)
        edge_mean = jnp.mean(edge_raw.reshape(M, Np, S, E), axis=2)   # [M, Np, E]

        parts = [self_raw]
        for m in range(M):
            parts.append(neigh_mean[m])
            parts.append(edge_mean[m])
        x_in = jnp.concatenate(parts, axis=1)                         # [Np, F+M*(F+E)]

        logits, beta = cling_forward(
            x_in, self.W_big, self.W_attBD, self.b_att_t, self.Q_sel, self.E_sel,
            self.W_fc1_rep, self.b_fc1, self.W_fc2, self.b_fc2,
            n_valid=B, n_mp=M)
        return logits[:B], beta.reshape(M)


# ---------------------------------- main ------------------------------------

if __name__ == "__main__":
    key = jax.random.PRNGKey(0)
    model = CLINGPallas(key)
    ids = jnp.arange(8, dtype=jnp.int32)   # batch of 8 node ids

    logits, weights = model(ids)
    jax.block_until_ready((logits, weights))
    assert logits.shape == (8, 4), logits.shape
    assert weights.shape == (2,), weights.shape
    assert bool(jnp.all(jnp.isfinite(logits)))
    assert bool(jnp.all(jnp.isfinite(weights)))
    print("KERNEL_OK")
</pallas_src>

<mosaic_0001>
module attributes {stable_mosaic.version = 11 : i64} {
  func.func @_cling_kernel(%arg0: memref<8x64xf32, #tpu.memory_space<vmem>>, %arg1: memref<64x64xf32, #tpu.memory_space<vmem>>, %arg2: memref<64x64xf32, #tpu.memory_space<vmem>>, %arg3: memref<1x64xf32, #tpu.memory_space<vmem>>, %arg4: memref<64x2xf32, #tpu.memory_space<vmem>>, %arg5: memref<2x64xf32, #tpu.memory_space<vmem>>, %arg6: memref<64x32xf32, #tpu.memory_space<vmem>>, %arg7: memref<1x32xf32, #tpu.memory_space<vmem>>, %arg8: memref<32x4xf32, #tpu.memory_space<vmem>>, %arg9: memref<1x4xf32, #tpu.memory_space<vmem>>, %arg10: memref<8x4xf32, #tpu.memory_space<vmem>>, %arg11: memref<1x2xf32, #tpu.memory_space<vmem>>) attributes {dimension_semantics = [], scalar_prefetch = 0 : i64, scratch_operands = 0 : i64, tpu.core_type = #tpu.core_type<tc>} {
    %c0 = arith.constant 0 : index
    %c0_0 = arith.constant 0 : index
    %0 = vector.load %arg0[%c0, %c0_0] : memref<8x64xf32, #tpu.memory_space<vmem>>, vector<8x64xf32>
    %c0_1 = arith.constant 0 : index
    %c0_2 = arith.constant 0 : index
    %1 = vector.load %arg1[%c0_1, %c0_2] : memref<64x64xf32, #tpu.memory_space<vmem>>, vector<64x64xf32>
    %cst = arith.constant dense<0.000000e+00> : vector<8x64xf32>
    %2 = tpu.matmul %0, %1, %cst {dimension_numbers = #tpu.dot_dimension_numbers<[1], [0], [0], [1], [0, 0, 1, 1], [], []>} : vector<8x64xf32>, vector<64x64xf32>, vector<8x64xf32> -> vector<8x64xf32>
    %cst_3 = arith.constant 0.000000e+00 : f32
    %3 = vector.broadcast %cst_3 : f32 to vector<8x64xf32>
    %4 = arith.maximumf %2, %3 : vector<8x64xf32>
    %c0_4 = arith.constant 0 : index
    %c0_5 = arith.constant 0 : index
    %5 = vector.load %arg2[%c0_4, %c0_5] : memref<64x64xf32, #tpu.memory_space<vmem>>, vector<64x64xf32>
    %cst_6 = arith.constant dense<0.000000e+00> : vector<8x64xf32>
    %6 = tpu.matmul %4, %5, %cst_6 {dimension_numbers = #tpu.dot_dimension_numbers<[1], [0], [0], [1], [0, 0, 1, 1], [], []>} : vector<8x64xf32>, vector<64x64xf32>, vector<8x64xf32> -> vector<8x64xf32>
    %c0_7 = arith.constant 0 : index
    %c0_8 = arith.constant 0 : index
    %7 = vector.load %arg3[%c0_7, %c0_8] : memref<1x64xf32, #tpu.memory_space<vmem>>, vector<1x64xf32>
    %8 = vector.broadcast %7 : vector<1x64xf32> to vector<8x64xf32>
    %9 = arith.addf %6, %8 : vector<8x64xf32>
    %10 = math.tanh %9 : vector<8x64xf32>
    %11 = tpu.iota {dimensions = array<i32: 0>} : vector<8x64xi32>
    %c8_i32 = arith.constant 8 : i32
    %12 = vector.broadcast %c8_i32 : i32 to vector<8x64xi32>
    %13 = arith.cmpi slt, %11, %12 : vector<8x64xi32>
    %14 = arith.extui %13 : vector<8x64xi1> to vector<8x64xi32>
    %15 = arith.sitofp %14 : vector<8x64xi32> to vector<8x64xf32>
    %16 = arith.mulf %10, %15 : vector<8x64xf32>
    %cst_9 = arith.constant dense<0.000000e+00> : vector<64xf32>
    %17 = vector.multi_reduction <add>, %16, %cst_9 [0] : vector<8x64xf32> to vector<64xf32>
    %18 = vector.shape_cast %17 : vector<64xf32> to vector<1x64xf32>
    %cst_10 = arith.constant 1.250000e-01 : f32
    %19 = vector.broadcast %cst_10 : f32 to vector<1x64xf32>
    %20 = arith.mulf %18, %19 : vector<1x64xf32>
    %c0_11 = arith.constant 0 : index
    %c0_12 = arith.constant 0 : index
    %21 = vector.load %arg4[%c0_11, %c0_12] : memref<64x2xf32, #tpu.memory_space<vmem>>, vector<64x2xf32>
    %cst_13 = arith.constant dense<0.000000e+00> : vector<1x2xf32>
    %22 = tpu.matmul %20, %21, %cst_13 {dimension_numbers = #tpu.dot_dimension_numbers<[1], [0], [0], [1], [0, 0, 1, 1], [], []>} : vector<1x64xf32>, vector<64x2xf32>, vector<1x2xf32> -> vector<1x2xf32>
    %cst_14 = arith.constant dense<0xFF800000> : vector<1xf32>
    %23 = vector.multi_reduction <maximumf>, %22, %cst_14 [1] : vector<1x2xf32> to vector<1xf32>
    %24 = vector.shape_cast %23 : vector<1xf32> to vector<1x1xf32>
    %25 = vector.broadcast %24 : vector<1x1xf32> to vector<1x2xf32>
    %26 = arith.subf %22, %25 : vector<1x2xf32>
    %27 = math.exp %26 : vector<1x2xf32>
    %cst_15 = arith.constant dense<0.000000e+00> : vector<1xf32>
    %28 = vector.multi_reduction <add>, %27, %cst_15 [1] : vector<1x2xf32> to vector<1xf32>
    %29 = vector.shape_cast %28 : vector<1xf32> to vector<1x1xf32>
    %30 = vector.broadcast %29 : vector<1x1xf32> to vector<1x2xf32>
    %31 = arith.divf %27, %30 : vector<1x2xf32>
    %c0_16 = arith.constant 0 : index
    %c0_17 = arith.constant 0 : index
    %32 = vector.load %arg11[%c0_16, %c0_17] : memref<1x2xf32, #tpu.memory_space<vmem>>, vector<1x2xf32>
    tpu.vector_store %arg11[%c0_16, %c0_17], %31 {strides = array<i32>} : memref<1x2xf32, #tpu.memory_space<vmem>>, vector<1x2xf32>,
    %c0_18 = arith.constant 0 : index
    %c0_19 = arith.constant 0 : index
    %33 = vector.load %arg5[%c0_18, %c0_19] : memref<2x64xf32, #tpu.memory_space<vmem>>, vector<2x64xf32>
    %cst_20 = arith.constant dense<0.000000e+00> : vector<1x64xf32>
    %34 = tpu.matmul %31, %33, %cst_20 {dimension_numbers = #tpu.dot_dimension_numbers<[1], [0], [0], [1], [0, 0, 1, 1], [], []>} : vector<1x2xf32>, vector<2x64xf32>, vector<1x64xf32> -> vector<1x64xf32>
    %35 = vector.broadcast %34 : vector<1x64xf32> to vector<8x64xf32>
    %36 = arith.mulf %4, %35 : vector<8x64xf32>
    %c0_21 = arith.constant 0 : index
    %c0_22 = arith.constant 0 : index
    %37 = vector.load %arg6[%c0_21, %c0_22] : memref<64x32xf32, #tpu.memory_space<vmem>>, vector<64x32xf32>
    %cst_23 = arith.constant dense<0.000000e+00> : vector<8x32xf32>
    %38 = tpu.matmul %36, %37, %cst_23 {dimension_numbers = #tpu.dot_dimension_numbers<[1], [0], [0], [1], [0, 0, 1, 1], [], []>} : vector<8x64xf32>, vector<64x32xf32>, vector<8x32xf32> -> vector<8x32xf32>
    %c0_24 = arith.constant 0 : index
    %c0_25 = arith.constant 0 : index
    %39 = vector.load %arg7[%c0_24, %c0_25] : memref<1x32xf32, #tpu.memory_space<vmem>>, vector<1x32xf32>
    %40 = vector.broadcast %39 : vector<1x32xf32> to vector<8x32xf32>
    %41 = arith.addf %38, %40 : vector<8x32xf32>
    %cst_26 = arith.constant 0.000000e+00 : f32
    %42 = vector.broadcast %cst_26 : f32 to vector<8x32xf32>
    %43 = arith.maximumf %41, %42 : vector<8x32xf32>
    %c0_27 = arith.constant 0 : index
    %c0_28 = arith.constant 0 : index
    %44 = vector.load %arg8[%c0_27, %c0_28] : memref<32x4xf32, #tpu.memory_space<vmem>>, vector<32x4xf32>
    %cst_29 = arith.constant dense<0.000000e+00> : vector<8x4xf32>
    %45 = tpu.matmul %43, %44, %cst_29 {dimension_numbers = #tpu.dot_dimension_numbers<[1], [0], [0], [1], [0, 0, 1, 1], [], []>} : vector<8x32xf32>, vector<32x4xf32>, vector<8x4xf32> -> vector<8x4xf32>
    %c0_30 = arith.constant 0 : index
    %c0_31 = arith.constant 0 : index
    %46 = vector.load %arg9[%c0_30, %c0_31] : memref<1x4xf32, #tpu.memory_space<vmem>>, vector<1x4xf32>
    %47 = vector.broadcast %46 : vector<1x4xf32> to vector<8x4xf32>
    %48 = arith.addf %45, %47 : vector<8x4xf32>
    %c0_32 = arith.constant 0 : index
    %c0_33 = arith.constant 0 : index
    %49 = vector.load %arg10[%c0_32, %c0_33] : memref<8x4xf32, #tpu.memory_space<vmem>>, vector<8x4xf32>
    tpu.vector_store %arg10[%c0_32, %c0_33], %48 {strides = array<i32>} : memref<8x4xf32, #tpu.memory_space<vmem>>, vector<8x4xf32>,
    return
  }
}

</mosaic_0001>

<bundles_post_ra>
// kernel: tpu_custom_call.1
= control target key start
LH: loop header
LB: loop body
LE: loop exit
PB: predicated region body
PF: predicated region fallthrough
CT: control target
= control target key end

     0   :  { %v830_v3 = vmov 0.0|0.0   ;;  %vm831_vm0 = vmmov 0   ;;  %v832_v6 = vmov 0.0   ;;  %s1078_s0 = inlined_call_operand.vmem [shape: f32[8,64], index: 0, kind: input, shape index: {}]   ;;  %s1079_s1 = inlined_call_operand.vmem [shape: f32[64,64], index: 1, kind: input, shape index: {}]   ;;  %s1080_s2 = inlined_call_operand.vmem [shape: f32[64,64], index: 2, kind: input, shape index: {}]   ;;  %s1081_s3 = inlined_call_operand.vmem [shape: f32[1,64], index: 3, kind: input, shape index: {}]   ;;  %s1082_s4 = inlined_call_operand.vmem [shape: f32[64,2], index: 4, kind: input, shape index: {}]   ;;  %s1083_s5 = inlined_call_operand.vmem [shape: f32[2,64], index: 5, kind: input, shape index: {}]   ;;  %s1084_s6 = inlined_call_operand.vmem [shape: f32[64,32], index: 6, kind: input, shape index: {}]   ;;  %s1085_s7 = inlined_call_operand.vmem [shape: f32[1,32], index: 7, kind: input, shape index: {}]   ;;  %s1086_s8 = inlined_call_operand.vmem [shape: f32[32,4], index: 8, kind: input, shape index: {}]   ;;  %s1087_s9 = inlined_call_operand.vmem [shape: f32[1,4], index: 9, kind: input, shape index: {}]   ;;  %s1088_s10 = inlined_call_operand.vmem [shape: f32[8,4], index: 10, kind: output, shape index: {0}]   ;;  %s1089_s11 = inlined_call_operand.hbm [shape: f32[1,2], index: 11, kind: output, shape index: {1}]  }
   0x1   :  { %v39_v0 = vld [vmem:[%s1079_s1] sm:$0xff]  ;;  %v40_v1 = vld [vmem:[%s1079_s1 + $0x8] sm:$0xff]  ;;  %v41_v2 = vld [vmem:[%s1079_s1 + $0x10] sm:$0xff]  ;;  %742 = vmatprep.subr.bf16.mxu0 %v830_v3  ;;  %666 = vmatprep.mubr.msk.f32.mxu0 %vm831_vm0, %v832_v6 }
   0x2   :  { %v743_v4 = vpack.c.bf16 %v40_v1, %v39_v0  ;;  %v42_v5 = vld [vmem:[%s1079_s1 + $0x18] sm:$0xff]  ;;  %754 = vmatprep.subr.bf16.mxu1 %v830_v3  ;;  %685 = vmatprep.mubr.msk.f32.mxu1 %vm831_vm0, %v832_v6  ;;  %v122_v8 = vld [vmem:[%s1080_s2] sm:$0xff]  ;;  %v123_v9 = vld [vmem:[%s1080_s2 + $0x8] sm:$0xff] }
   0x3   :  { %v746_v7 = vpack.c.bf16 %v42_v5, %v41_v2  ;;  %v124_v10 = vld [vmem:[%s1080_s2 + $0x10] sm:$0xff]  ;;  %v43_v11 = vld [vmem:[%s1079_s1 + $0x20] sm:$0xff]  ;;  %v44_v12 = vld [vmem:[%s1079_s1 + $0x28] sm:$0xff]  ;;  %v755_v13 = vpack.c.bf16 %v123_v9, %v122_v8 }
   0x4   :  { %744 = vmatpush3.bf16.msra.mxu0 %v743_v4  ;;  %v125_v14 = vld [vmem:[%s1080_s2 + $0x18] sm:$0xff] }
   0x5   :  { %745 = vmatprep.subr.bf16.mxu0 %v830_v3 }
   0x6   :  { %17 = vsyncpa [#allocation3], 0  ;;  %756 = vmatpush3.bf16.msra.mxu1 %v755_v13  ;;  %v758_v15 = vpack.c.bf16 %v125_v14, %v124_v10  ;;  %v749_v16 = vpack.c.bf16 %v44_v12, %v43_v11  ;;  %v126_v17 = vld [vmem:[%s1080_s2 + $0x20] sm:$0xff]  ;;  %v127_v18 = vld [vmem:[%s1080_s2 + $0x28] sm:$0xff]  ;;  %vm47_vm1 = vcmask 523264   ;;  %vm306_vm2 = vcmask 8192  }
   0x7   :  { %757 = vmatprep.subr.bf16.mxu1 %v830_v3  ;;  %v45_v19 = vld [vmem:[%s1079_s1 + $0x30] sm:$0xff]  ;;  %v46_v20 = vld [vmem:[%s1079_s1 + $0x38] sm:$0xff]  ;;  %v761_v21 = vpack.c.bf16 %v127_v18, %v126_v17  ;;  %v38_v23 = vld [vmem:[%s1078_s0] sm:$0xff]  ;;  %vm324_vm3 = vcmask 1041408   ;;  %vm320_vm4 = vcmask 15360   ;;  %vm503_vm5 = vcmask 261120  }
   0x8   :  { %747 = vmatpush3.bf16.msra.mxu0 %v746_v7  ;;  %v752_v22 = vpack.c.bf16 %v46_v20, %v45_v19  ;;  %v128_v24 = vld [vmem:[%s1080_s2 + $0x30] sm:$0xff]  ;;  %v129_v25 = vld [vmem:[%s1080_s2 + $0x38] sm:$0xff]  ;;  %v225_v30 = vld [vmem:[%s1082_s4] sm:$0xff]  ;;  %v398_v19 = vlaneseq  ;;  %s833_s1 = smov [#allocation2]  }
   0x9   :  { %748 = vmatprep.subr.bf16.mxu0 %v830_v3  ;;  %v764_v26 = vpack.c.bf16 %v129_v25, %v128_v24  ;;  %v226_v31 = vld [vmem:[%s1082_s4 + $0x8] sm:$0xff]  ;;  %v227_v33 = vld [vmem:[%s1082_s4 + $0x10] sm:$0xff]  ;;  %v228_v34 = vld [vmem:[%s1082_s4 + $0x18] sm:$0xff]  ;;  %s587_s28 = sshll.u32 %s833_s1, 4  ;;  %s588_s28 = int_to_ptr.vmem [resolvable:$true] %s587_s28 }
   0xa   :  { %759 = vmatpush3.bf16.msra.mxu1 %v758_v15  ;;  %v767_v32 = vpack.c.bf16 %v226_v31, %v225_v30  ;;  %v770_v35 = vpack.c.bf16 %v228_v34, %v227_v33  ;;  %v229_v36 = vld [vmem:[%s1082_s4 + $0x20] sm:$0xff]  ;;  %v230_v37 = vld [vmem:[%s1082_s4 + $0x28] sm:$0xff]  ;;  %v231_v38 = vld [vmem:[%s1082_s4 + $0x30] sm:$0xff]  ;;  %v399_v20 = vshrl.u32 %v398_v19, 7  ;;  %s806_s29 = scalar_lea.vmem %s588_s28, 16  ;;  %s810_s30 = scalar_lea.vmem %s588_s28, 32 }
   0xb   :  { %760 = vmatprep.subr.bf16.mxu1 %v830_v3  ;;  %v773_v39 = vpack.c.bf16 %v230_v37, %v229_v36  ;;  %v232_v40 = vld [vmem:[%s1082_s4 + $0x38] sm:$0xff]  ;;  %v598_v42 = vld [vmem:[%s1081_s3] ss:$0 sm:$0xff]  ;;  %v404_v2 = vld [vmem:[%s1084_s6 + $0x8] sm:$0xff]  ;;  %p807_p0 = scmp.ne.s32.totalorder %s588_s28, %s806_s29  ;;  %p811_p1 = scmp.lt.s32.totalorder %s588_s28, %s588_s28 }
   0xc   :  { %750 = vmatpush3.bf16.msra.mxu0 %v749_v16  ;;  %v776_v41 = vpack.c.bf16 %v232_v40, %v231_v38  ;;  %v319_v63 = vld [vmem:[%s1083_s5] sm:$0x3]  ;;  %v405_v8 = vld [vmem:[%s1084_s6 + $0x10] sm:$0xff]  ;;  %v406_v9 = vld [vmem:[%s1084_s6 + $0x18] sm:$0xff]  ;;  %p812_p2 = scmp.lt.s32.totalorder %s810_s30, %s806_s29 }
   0xd   :  { %751 = vmatprep.subr.bf16.mxu0 %v830_v3  ;;  %v403_v1 = vld [vmem:[%s1084_s6] sm:$0xff]  ;;  %v782_v10 = vpack.c.bf16 %v406_v9, %v405_v8  ;;  %v408_v12 = vld [vmem:[%s1084_s6 + $0x28] sm:$0xff]  ;;  %v410_v14 = vld [vmem:[%s1084_s6 + $0x38] sm:$0xff] }
   0xe   :  { %762 = vmatpush3.bf16.msra.mxu1 %v761_v21  ;;  %v779_v5 = vpack.c.bf16 %v404_v2, %v403_v1  ;;  %v407_v11 = vld [vmem:[%s1084_s6 + $0x20] sm:$0xff]  ;;  %v493_v17 = vld [vmem:[%s1086_s8 + $0x8] sm:$0xff]  ;;  %v400_v21 = vsub.s32 0, %v399_v20  ;;  %p813_p3 = por %p812_p2, %p811_p1 }
   0xf   :  { %763 = vmatprep.subr.bf16.mxu1 %v830_v3  ;;  %v785_v13 = vpack.c.bf16 %v408_v12, %v407_v11  ;;  %v492_v16 = vld [vmem:[%s1086_s8] sm:$0xff] }
  0x10   :  { %753 = vmatpush3.bf16.msra.mxu0 %v752_v22  ;;  %v791_v18 = vpack.c.bf16 %v493_v17, %v492_v16  ;;  %v603_v30 = vld [vmem:[%s1085_s7] ss:$0 sm:$0xff]  ;;  %p814_p4 = pnand %p813_p3, %p807_p0 }
  0x11   :  { %766 = vmatprep.subr.bf16.mxu0 %v830_v3 }
  0x12   :  { %765 = vmatpush3.bf16.msra.mxu1 %v764_v26  ;;  %v494_v26 = vld [vmem:[%s1086_s8 + $0x10] sm:$0xff] }
  0x13   :  { %667 = vmatmul.mubr.msk.f32.vlgmr.msra.gmra.mrb[0].mxu0 %vm47_vm1, %v38_v23  ;;  %707 = vmatprep.subr.mxu1 %v832_v6 }
  0x14   :  { %704 = vmatprep.mubr.msk.f32.mxu0 %vm831_vm0, %v832_v6  ;;  %768 = vmatpush3.bf16.msra.mxu0 %v767_v32 }
  0x15   :  { %769 = vmatprep.subr.bf16.mxu0 %v830_v3 }
  0x18   :  { %771 = vmatpush3.bf16.msra.mxu0 %v770_v35 }
  0x19   :  { %772 = vmatprep.subr.bf16.mxu0 %v830_v3 }
  0x1c   :  { %774 = vmatpush3.bf16.msra.mxu0 %v773_v39 }
  0x1d   :  { %775 = vmatprep.subr.bf16.mxu0 %v830_v3 }
  0x20   :  { %777 = vmatpush3.bf16.msra.mxu0 %v776_v41 }
  0x21   :  { %790 = vmatprep.subr.bf16.mxu0 %v830_v3 }
  0xe6   :  { %v962_v27 = vpop.f32.mrb[0].mxu0 }
  0xe7   :  { %v121_v28 = vmax.f32 %v962_v27, 0.0  ;;  %v668_v29 = vpop.f32.mrb[1].mxu0 }
  0xe8   :  { %v495_v29 = vld [vmem:[%s1086_s8 + $0x18] sm:$0xff] }
  0xe9   :  { %686 = vmatmul.mubr.msk.f32.vlgmr.msra.gmra.mrb[0].mxu1 %vm47_vm1, %v121_v28 }
  0xea   :  { %709 = vmatprep.mubr.msk.f32.mxu1 %vm831_vm0, %v832_v6  ;;  %708 = vmatpush3.msk.msra.mxu1 %vm324_vm3, %v319_v63 }
  0xeb   :  { %778 = vmatprep.subr.bf16.mxu1 %v830_v3 }
 0x1bc   :  { %v206_v43 = vpop.f32.mrb[0].mxu1 }
 0x1bd   :  { %v207_v44 = vadd.f32 %v598_v42, %v206_v43  ;;  %v687_v45 = vpop.f32.mrb[1].mxu1 }
 0x1bf   :  { %800 = vtanh.f32 %v207_v44 }
 0x1c9   :  { %v801_v46 = vpop.eup %800 }
 0x1ca   :  { %v217_v47 = vsel %vm47_vm1, %v801_v46, 0.0 }
 0x1cb   :  { %v218_v48 = vrot.slane %v217_v47, 4 }
 0x1cd   :  { %v219_v49 = vadd.f32 %v218_v48, %v217_v47 }
 0x1cf   :  { %v220_v50 = vrot.slane %v219_v49, 2 }
 0x1d1   :  { %v221_v51 = vadd.f32 %v220_v50, %v219_v49 }
 0x1d3   :  { %v222_v52 = vrot.slane %v221_v51, 1 }
 0x1d5   :  { %v223_v53 = vadd.f32 %v222_v52, %v221_v51 }
 0x1d7   :  { %v224_v54 = vmul.f32 0.125, %v223_v53 }
 0x1d9   :  { %705 = vmatmul.mubr.msk.f32.vlgmr.msra.gmra.mrb[2].mxu0 %vm47_vm1, %v224_v54 }
 0x1da   :  { %739 = vmatprep.mubr.msk.f32.mxu0 %vm831_vm0, %v832_v6  ;;  %792 = vmatpush3.bf16.msra.mxu0 %v791_v18 }
 0x1db   :  { %793 = vmatprep.subr.bf16.mxu0 %v830_v3 }
 0x2ac   :  { %v302_v55 = vpop.f32.mrb[2].mxu0 }
 0x2ad   :  { %v706_v56 = vpop.f32.mrb[3].mxu0  ;;  %v307_v57 = vsel %vm306_vm2, %v302_v55, -inf }
 0x2ae   :  { %308 = vmax.xlane.f32.xlu0 %v307_v57 }
 0x33b   :  { %v309_v58 = vpop.xlane.xlu0 %308 }
 0x33c   :  { %v310_v59 = vsub.f32 %v302_v55, %v309_v58 }
 0x33e   :  { %v311_v60 = vmul.f32 1.442695, %v310_v59 }
 0x340   :  { %802 = vpow2.f32 %v311_v60 }
 0x34a   :  { %v803_v61 = vpop.eup %802 }
 0x34b   :  { %v313_v62 = vsel %vm306_vm2, %v803_v61, 0.0 }
 0x34c   :  { %314 = vadd.xlane.f32.xlu0 %v313_v62 }
 0x3d9   :  { %v315_v0 = vpop.xlane.xlu0 %314 }
 0x3da   :  { %804 = vrcp.f32 %v315_v0 }
 0x3e4   :  { %v805_v4 = vpop.eup %804 }
 0x3e5   :  { %v317_v7 = vmul.f32 %v805_v4, %v803_v61 }
 0x3e7   :  { %318 = vst.msk [vmem:[#allocation2] sm:$0x1] %vm306_vm2, %v317_v7  ;;  %710 = vmatmul.mubr.msk.f32.vlgmr.msra.gmra.mrb[2].mxu1 %vm320_vm4, %v317_v7 }
 0x3e8   :  { %780 = vmatpush3.bf16.msra.mxu1 %v779_v5  ;;  %728 = vmatprep.mubr.msk.f32.mxu1 %vm831_vm0, %v832_v6  ;;  %v409_v6 = vld [vmem:[%s1084_s6 + $0x30] sm:$0xff] }
 0x3e9   :  { %781 = vmatprep.subr.bf16.mxu1 %v830_v3  ;;  %v788_v15 = vpack.c.bf16 %v410_v14, %v409_v6 }
 0x3ec   :  { %783 = vmatpush3.bf16.msra.mxu1 %v782_v10 }
 0x3ed   :  { %784 = vmatprep.subr.bf16.mxu1 %v830_v3 }
 0x3f0   :  { %786 = vmatpush3.bf16.msra.mxu1 %v785_v13 }
 0x3f1   :  { %787 = vmatprep.subr.bf16.mxu1 %v830_v3  ;;  %v794_v3 = vpack.c.bf16 %v495_v29, %v494_v26 }
 0x3f3   :  { %795 = vmatpush3.bf16.msra.mxu0 %v794_v3 }
 0x3f4   :  { %789 = vmatpush3.bf16.msra.mxu1 %v788_v15 }
 0x4ba   :  { %v394_v22 = vpop.f32.mrb[2].mxu1 }
 0x4bb   :  { %v401_v23 = vrot.slane %v394_v22, %v400_v21  ;;  %v711_v24 = vpop.f32.mrb[3].mxu1 }
 0x4bd   :  { %v402_v25 = vmul.f32 %v401_v23, %v121_v28 }
 0x4bf   :  { %729 = vmatmul.mubr.msk.f32.vlgmr.msra.gmra.mrb[4].mxu1 %vm47_vm1, %v402_v25 }
 0x592   :  { %v487_v31 = vpop.f32.mrb[4].mxu1 }
 0x593   :  { %v488_v32 = vadd.f32 %v603_v30, %v487_v31  ;;  %v730_v27 = vpop.f32.mrb[5].mxu1 }
 0x595   :  { %v491_v28 = vmax.f32 %v488_v32, 0.0 }
 0x597   :  { %740 = vmatmul.mubr.msk.f32.vlgmr.msra.gmra.mrb[4].mxu0 %vm503_vm5, %v491_v28 }
 0x598   :  { %817 = shalt.err (!%p814_p4)
}
 0x599   :  { %s818_s7 = scalar_lea.hbm %s1089_s11, 16 }
 0x59a   :  { %p819_p5 = scmp.ne.s32.totalorder %s1089_s11, %s818_s7  ;;  %p822_p6 = scmp.lt.u32.totalorder %s818_s7, %s1089_s11 }
 0x59c   :  { %p824_p7 = pnand %p822_p6, %p819_p5 }
 0x59e   :  { %827 = shalt.err (!%p824_p7)
}
 0x59f   :  { %590 = dma.vmem_to_hbm [thread:$0]  %s588_s28, 16, %s1089_s11, [#allocation3]   ;;  %v605_v33 = vld [vmem:[%s1087_s9] ss:$0 sm:$0xff]  ;;  %vm577_vm6 = vcmask 31744  }
 0x66a   :  { %v573_v34 = vpop.f32.mrb[4].mxu0 }
 0x66b   :  { %v574_v35 = vadd.f32 %v605_v33, %v573_v34  ;;  %v741_v36 = vpop.f32.mrb[5].mxu0 }
 0x66d   :  { %578 = vst.msk [vmem:[%s1088_s10] sm:$0xff] %vm577_vm6, %v574_v35 }
 0x66e   :  { %828 = dma.done.wait [#allocation3], 16  }
 0x66f   :  { %829 = vsyncadd [#allocation3], 4294967280 }
 0x670   :  { %596 = vsyncpa [#allocation3], 1 }

</bundles_post_ra>
